<compile_context>
chip_gen: v6e
topology: v6e:2x2x1
jax: 0.10.0
libtpu: 0.0.40
codegen_flags: <defaults>
</compile_context>

<pallas_src>
import functools

import jax
import jax.numpy as jnp
from jax.experimental import pallas as pl
from jax.experimental.pallas import tpu as pltpu


def _round_up(x, m):
    return ((x + m - 1) // m) * m


def _policy_head_kernel(idx_ref, state_ref, emb_ref, out_ref,
                        m_ref, s_ref, g_ref,
                        *, inv_temperature, n_items, tn):
    k = pl.program_id(0)

    @pl.when(k == 0)
    def _():
        m_ref[...] = jnp.full(m_ref.shape, -jnp.inf, dtype=m_ref.dtype)
        s_ref[...] = jnp.zeros(s_ref.shape, dtype=s_ref.dtype)
        g_ref[...] = jnp.zeros(g_ref.shape, dtype=g_ref.dtype)

    # logits[b, n] = (sum_d state[b, d] * emb[n, d]) / T
    # contract dim 1 of both operands -> MXU "trans_b", no transpose anywhere.
    logits = jax.lax.dot_general(
        state_ref[...], emb_ref[...],
        dimension_numbers=(((1,), (1,)), ((), ())),
        preferred_element_type=jnp.float32,
    ) * inv_temperature                                         # (B, TN)

    # global item/column index of each lane in this tile
    cols = jax.lax.broadcasted_iota(jnp.int32, logits.shape, 1) + k * tn

    if n_items % tn != 0:
        # last tile contains zero-padded embedding rows: exclude from softmax
        logits = jnp.where(cols < n_items, logits, -1e30)

    # ---- online softmax statistics (running max / rescaled running sum) ----
    m_old = m_ref[...]
    m_new = jnp.maximum(m_old, jnp.max(logits, axis=-1, keepdims=True))
    alpha = jnp.exp(m_old - m_new)
    s_ref[...] = alpha * s_ref[...] + jnp.sum(jnp.exp(logits - m_new),
                                              axis=-1, keepdims=True)
    m_ref[...] = m_new

    # ---- accumulate the single indexed logit per row (lane mask + reduce) ----
    match = cols == idx_ref[...]                                # (B,1) -> (B,TN)
    g_ref[...] += jnp.sum(jnp.where(match, logits, 0.0), axis=-1, keepdims=True)

    # ---- finalize: O(B) exp / divide / log, epsilon kept inside the log ----
    @pl.when(k == pl.num_programs(0) - 1)
    def _():
        p_idx = jnp.exp(g_ref[...] - m_ref[...]) / s_ref[...]
        out_ref[...] = jnp.log(p_idx + 1e-8)


def softmax_stochastic_policy_head(state, item_embeddings, item_index,
                                   softmax_temperature=1.0, tn=512):
    """state: (B, D) f32; item_embeddings: (N, D) f32; item_index: (B,) or (B,1) int.

    Returns log(softmax(state @ emb.T / T) + 1e-8)[b, item_index[b]], shape (B, 1) f32.
    """
    B, D = state.shape
    N, D2 = item_embeddings.shape
    assert D == D2, "State & item embedding vector size should match."

    # lane-dense tile on the item axis (multiple of 128), capped at the table size
    tn = min(int(tn), _round_up(N, 128))
    tn = _round_up(tn, 128)
    n_pad = _round_up(N, tn)
    if n_pad != N:
        item_embeddings = jnp.pad(item_embeddings, ((0, n_pad - N), (0, 0)))

    idx = item_index.reshape(B, 1).astype(jnp.int32)

    kernel = functools.partial(
        _policy_head_kernel,
        inv_temperature=1.0 / float(softmax_temperature),
        n_items=N,
        tn=tn,
    )

    return pl.pallas_call(
        kernel,
        out_shape=jax.ShapeDtypeStruct((B, 1), jnp.float32),
        grid_spec=pltpu.PrefetchScalarGridSpec(
            num_scalar_prefetch=0,
            grid=(n_pad // tn,),
            in_specs=[
                pl.BlockSpec((B, 1), lambda k: (0, 0)),     # item_index (resident)
                pl.BlockSpec((B, D), lambda k: (0, 0)),     # state      (resident)
                pl.BlockSpec((tn, D), lambda k: (k, 0)),    # embeddings (streamed)
            ],
            out_specs=pl.BlockSpec((B, 1), lambda k: (0, 0)),
            scratch_shapes=[pltpu.VMEM((B, 1), jnp.float32),   # running max
                            pltpu.VMEM((B, 1), jnp.float32),   # running sum
                            pltpu.VMEM((B, 1), jnp.float32)],  # gathered logit
        ),
        compiler_params=pltpu.CompilerParams(
            dimension_semantics=("arbitrary",),   # item axis is a reduction
        ),
    )(idx, state, item_embeddings)


# TODO(synk): adaptive_softmax=True branch (nn.AdaptiveLogSoftmaxWithLoss) has no
# clean Pallas equivalent and is not implemented; only the full-softmax path is.


if __name__ == "__main__":
    B, D, N = 4, 32, 256        # batch, state_vector_dim, n_items
    T = 2.0                     # softmax_temperature

    key = jax.random.PRNGKey(0)
    k_state, k_emb, k_idx = jax.random.split(key, 3)

    state = jax.random.normal(k_state, (B, D), dtype=jnp.float32)
    # nn.Embedding default init is N(0, 1)
    item_embeddings = jax.random.normal(k_emb, (N, D), dtype=jnp.float32)
    item_index = jax.random.randint(k_idx, (B, 1), 0, N, dtype=jnp.int32)

    # tn=128 -> 2 grid steps, exercising the streamed online-softmax path
    out = softmax_stochastic_policy_head(
        state, item_embeddings, item_index, softmax_temperature=T, tn=128
    )
    out = jax.block_until_ready(out)

    # pure-JAX reference of the PyTorch forward
    logits = (state @ item_embeddings.T) / T
    logp = jnp.log(jax.nn.softmax(logits, axis=-1) + 1e-8)
    ref = jnp.take_along_axis(logp, item_index, axis=-1)

    assert out.shape == (B, 1), out.shape
    assert jnp.allclose(out, ref, atol=1e-5, rtol=1e-5), (out, ref)
    print("KERNEL_OK")
</pallas_src>

<mosaic_0001>
module attributes {stable_mosaic.version = 11 : i64} {
  func.func @_policy_head_kernel(%arg0: i32, %arg1: memref<4x1xi32, #tpu.memory_space<vmem>>, %arg2: memref<4x32xf32, #tpu.memory_space<vmem>>, %arg3: memref<128x32xf32, #tpu.memory_space<vmem>>, %arg4: memref<4x1xf32, #tpu.memory_space<vmem>>, %arg5: memref<4x1xf32, #tpu.memory_space<vmem>>, %arg6: memref<4x1xf32, #tpu.memory_space<vmem>>, %arg7: memref<4x1xf32, #tpu.memory_space<vmem>>) attributes {dimension_semantics = [#tpu.dimension_semantics<arbitrary>], iteration_bounds = array<i64: 2>, scalar_prefetch = 0 : i64, scratch_operands = 3 : i64, tpu.core_type = #tpu.core_type<tc>, window_params = [{pipeline_mode = #tpu.pipeline_mode<synchronous>, transform_indices = @transform_0, window_bounds = array<i64: 4, 1>}, {pipeline_mode = #tpu.pipeline_mode<synchronous>, transform_indices = @transform_1, window_bounds = array<i64: 4, 32>}, {transform_indices = @transform_2, window_bounds = array<i64: 128, 32>}, {pipeline_mode = #tpu.pipeline_mode<synchronous>, transform_indices = @transform_3, window_bounds = array<i64: 4, 1>}]} {
    %c0_i32 = arith.constant 0 : i32
    %0 = arith.cmpi eq, %arg0, %c0_i32 : i32
    %1 = arith.extui %0 : i1 to i32
    %c0_i32_0 = arith.constant 0 : i32
    %2 = arith.cmpi ne, %1, %c0_i32_0 : i32
    scf.if %2 {
      %cst_24 = arith.constant 0xFF800000 : f32
      %41 = vector.broadcast %cst_24 : f32 to vector<4x1xf32>
      %c0_25 = arith.constant 0 : index
      %c0_26 = arith.constant 0 : index
      %42 = vector.load %arg5[%c0_25, %c0_26] : memref<4x1xf32, #tpu.memory_space<vmem>>, vector<4x1xf32>
      tpu.vector_store %arg5[%c0_25, %c0_26], %41 {strides = array<i32>} : memref<4x1xf32, #tpu.memory_space<vmem>>, vector<4x1xf32>,
      %cst_27 = arith.constant 0.000000e+00 : f32
      %43 = vector.broadcast %cst_27 : f32 to vector<4x1xf32>
      %c0_28 = arith.constant 0 : index
      %c0_29 = arith.constant 0 : index
      %44 = vector.load %arg6[%c0_28, %c0_29] : memref<4x1xf32, #tpu.memory_space<vmem>>, vector<4x1xf32>
      tpu.vector_store %arg6[%c0_28, %c0_29], %43 {strides = array<i32>} : memref<4x1xf32, #tpu.memory_space<vmem>>, vector<4x1xf32>,
      %cst_30 = arith.constant 0.000000e+00 : f32
      %45 = vector.broadcast %cst_30 : f32 to vector<4x1xf32>
      %c0_31 = arith.constant 0 : index
      %c0_32 = arith.constant 0 : index
      %46 = vector.load %arg7[%c0_31, %c0_32] : memref<4x1xf32, #tpu.memory_space<vmem>>, vector<4x1xf32>
      tpu.vector_store %arg7[%c0_31, %c0_32], %45 {strides = array<i32>} : memref<4x1xf32, #tpu.memory_space<vmem>>, vector<4x1xf32>,
    } else {
    }
    %c0 = arith.constant 0 : index
    %c0_1 = arith.constant 0 : index
    %3 = vector.load %arg2[%c0, %c0_1] : memref<4x32xf32, #tpu.memory_space<vmem>>, vector<4x32xf32>
    %c0_2 = arith.constant 0 : index
    %c0_3 = arith.constant 0 : index
    %4 = vector.load %arg3[%c0_2, %c0_3] : memref<128x32xf32, #tpu.memory_space<vmem>>, vector<128x32xf32>
    %cst = arith.constant dense<0.000000e+00> : vector<4x128xf32>
    %5 = tpu.matmul %3, %4, %cst {dimension_numbers = #tpu.dot_dimension_numbers<[1], [1], [0], [0], [0, 0, 1, 0], [], []>} : vector<4x32xf32>, vector<128x32xf32>, vector<4x128xf32> -> vector<4x128xf32>
    %cst_4 = arith.constant 5.000000e-01 : f32
    %6 = vector.broadcast %cst_4 : f32 to vector<4x128xf32>
    %7 = arith.mulf %5, %6 : vector<4x128xf32>
    %8 = tpu.iota {dimensions = array<i32: 1>} : vector<4x128xi32>
    %c128_i32 = arith.constant 128 : i32
    %9 = arith.muli %arg0, %c128_i32 : i32
    %10 = vector.broadcast %9 : i32 to vector<4x128xi32>
    %11 = arith.addi %8, %10 : vector<4x128xi32>
    %c0_5 = arith.constant 0 : index
    %c0_6 = arith.constant 0 : index
    %12 = vector.load %arg5[%c0_5, %c0_6] : memref<4x1xf32, #tpu.memory_space<vmem>>, vector<4x1xf32>
    %cst_7 = arith.constant dense<0xFF800000> : vector<4xf32>
    %13 = vector.multi_reduction <maximumf>, %7, %cst_7 [1] : vector<4x128xf32> to vector<4xf32>
    %14 = vector.shape_cast %13 : vector<4xf32> to vector<4x1xf32>
    %15 = arith.maximumf %12, %14 : vector<4x1xf32>
    %16 = arith.subf %12, %15 : vector<4x1xf32>
    %17 = math.exp %16 : vector<4x1xf32>
    %c0_8 = arith.constant 0 : index
    %c0_9 = arith.constant 0 : index
    %18 = vector.load %arg6[%c0_8, %c0_9] : memref<4x1xf32, #tpu.memory_space<vmem>>, vector<4x1xf32>
    %19 = arith.mulf %17, %18 : vector<4x1xf32>
    %20 = vector.broadcast %15 : vector<4x1xf32> to vector<4x128xf32>
    %21 = arith.subf %7, %20 : vector<4x128xf32>
    %22 = math.exp %21 : vector<4x128xf32>
    %cst_10 = arith.constant dense<0.000000e+00> : vector<4xf32>
    %23 = vector.multi_reduction <add>, %22, %cst_10 [1] : vector<4x128xf32> to vector<4xf32>
    %24 = vector.shape_cast %23 : vector<4xf32> to vector<4x1xf32>
    %25 = arith.addf %19, %24 : vector<4x1xf32>
    %c0_11 = arith.constant 0 : index
    %c0_12 = arith.constant 0 : index
    %26 = vector.load %arg6[%c0_11, %c0_12] : memref<4x1xf32, #tpu.memory_space<vmem>>, vector<4x1xf32>
    tpu.vector_store %arg6[%c0_11, %c0_12], %25 {strides = array<i32>} : memref<4x1xf32, #tpu.memory_space<vmem>>, vector<4x1xf32>,
    %c0_13 = arith.constant 0 : index
    %c0_14 = arith.constant 0 : index
    %27 = vector.load %arg5[%c0_13, %c0_14] : memref<4x1xf32, #tpu.memory_space<vmem>>, vector<4x1xf32>
    tpu.vector_store %arg5[%c0_13, %c0_14], %15 {strides = array<i32>} : memref<4x1xf32, #tpu.memory_space<vmem>>, vector<4x1xf32>,
    %c0_15 = arith.constant 0 : index
    %c0_16 = arith.constant 0 : index
    %28 = vector.load %arg1[%c0_15, %c0_16] : memref<4x1xi32, #tpu.memory_space<vmem>>, vector<4x1xi32>
    %29 = vector.broadcast %28 : vector<4x1xi32> to vector<4x128xi32>
    %30 = arith.cmpi eq, %11, %29 : vector<4x128xi32>
    %c0_17 = arith.constant 0 : index
    %c0_18 = arith.constant 0 : index
    %31 = vector.load %arg7[%c0_17, %c0_18] : memref<4x1xf32, #tpu.memory_space<vmem>>, vector<4x1xf32>
    %cst_19 = arith.constant 0.000000e+00 : f32
    %32 = vector.broadcast %cst_19 : f32 to vector<4x128xf32>
    %33 = arith.select %30, %7, %32 : vector<4x128xi1>, vector<4x128xf32>
    %cst_20 = arith.constant dense<0.000000e+00> : vector<4xf32>
    %34 = vector.multi_reduction <add>, %33, %cst_20 [1] : vector<4x128xf32> to vector<4xf32>
    %35 = vector.shape_cast %34 : vector<4xf32> to vector<4x1xf32>
    %36 = arith.addf %31, %35 : vector<4x1xf32>
    %c0_21 = arith.constant 0 : index
    %c0_22 = arith.constant 0 : index
    %37 = vector.load %arg7[%c0_21, %c0_22] : memref<4x1xf32, #tpu.memory_space<vmem>>, vector<4x1xf32>
    tpu.vector_store %arg7[%c0_21, %c0_22], %36 {strides = array<i32>} : memref<4x1xf32, #tpu.memory_space<vmem>>, vector<4x1xf32>,
    %c1_i32 = arith.constant 1 : i32
    %38 = arith.cmpi eq, %arg0, %c1_i32 : i32
    %39 = arith.extui %38 : i1 to i32
    %c0_i32_23 = arith.constant 0 : i32
    %40 = arith.cmpi ne, %39, %c0_i32_23 : i32
    scf.if %40 {
      %c0_24 = arith.constant 0 : index
      %c0_25 = arith.constant 0 : index
      %41 = vector.load %arg7[%c0_24, %c0_25] : memref<4x1xf32, #tpu.memory_space<vmem>>, vector<4x1xf32>
      %c0_26 = arith.constant 0 : index
      %c0_27 = arith.constant 0 : index
      %42 = vector.load %arg5[%c0_26, %c0_27] : memref<4x1xf32, #tpu.memory_space<vmem>>, vector<4x1xf32>
      %43 = arith.subf %41, %42 : vector<4x1xf32>
      %44 = math.exp %43 : vector<4x1xf32>
      %c0_28 = arith.constant 0 : index
      %c0_29 = arith.constant 0 : index
      %45 = vector.load %arg6[%c0_28, %c0_29] : memref<4x1xf32, #tpu.memory_space<vmem>>, vector<4x1xf32>
      %46 = arith.divf %44, %45 : vector<4x1xf32>
      %cst_30 = arith.constant 9.99999993E-9 : f32
      %47 = vector.broadcast %cst_30 : f32 to vector<4x1xf32>
      %48 = arith.addf %46, %47 : vector<4x1xf32>
      %49 = math.log %48 : vector<4x1xf32>
      %c0_31 = arith.constant 0 : index
      %c0_32 = arith.constant 0 : index
      %50 = vector.load %arg4[%c0_31, %c0_32] : memref<4x1xf32, #tpu.memory_space<vmem>>, vector<4x1xf32>
      tpu.vector_store %arg4[%c0_31, %c0_32], %49 {strides = array<i32>} : memref<4x1xf32, #tpu.memory_space<vmem>>, vector<4x1xf32>,
    } else {
    }
    return
  }
  func.func @transform_0(%arg0: i32) -> (i32, i32) {
    %c0_i32 = arith.constant 0 : i32
    %c0_i32_0 = arith.constant 0 : i32
    %c0_i32_1 = arith.constant 0 : i32
    return %c0_i32, %c0_i32_0 : i32, i32
  }
  func.func @transform_1(%arg0: i32) -> (i32, i32) {
    %c0_i32 = arith.constant 0 : i32
    %c0_i32_0 = arith.constant 0 : i32
    %c0_i32_1 = arith.constant 0 : i32
    return %c0_i32, %c0_i32_0 : i32, i32
  }
  func.func @transform_2(%arg0: i32) -> (i32, i32) {
    %c0_i32 = arith.constant 0 : i32
    %c0_i32_0 = arith.constant 0 : i32
    return %arg0, %c0_i32 : i32, i32
  }
  func.func @transform_3(%arg0: i32) -> (i32, i32) {
    %c0_i32 = arith.constant 0 : i32
    %c0_i32_0 = arith.constant 0 : i32
    %c0_i32_1 = arith.constant 0 : i32
    return %c0_i32, %c0_i32_0 : i32, i32
  }
}

</mosaic_0001>

<bundles_post_ra>
// kernel: tpu_custom_call.1
= control target key start
LH: loop header
LB: loop body
LE: loop exit
PB: predicated region body
PF: predicated region fallthrough
CT: control target
= control target key end

     0   :  { %s531_s12 = smov 0   ;;  %s602_s0 = inlined_call_operand.vmem [shape: s32[4,1], index: 0, kind: input, shape index: {}]   ;;  %s603_s1 = inlined_call_operand.vmem [shape: f32[4,32], index: 1, kind: input, shape index: {}]   ;;  %s604_s2 = inlined_call_operand.vmem [shape: f32[256,32], index: 2, kind: input, shape index: {}]   ;;  %s605_s3 = inlined_call_operand.vmem [shape: f32[4,1], index: 3, kind: output, shape index: {}]  }
   0x1 LB: > { %s537_s13 = sadd.s32 4294967295, %s504_s12   ;;  %p396_p0 = scmp.ge.s32.totalorder %s504_s12, 1  ;;  %s504_s12 = sphi %s531_s12, %s13_s12  }
   0x2   : > { %p133_p1 = scmp.lt.s32.totalorder %s504_s12, 3 }
   0x4   : > { %p134_p2 = pnand %p396_p0, %p133_p1 }
   0x5   : > { %s397_s14 = sshll.u32 (!%p134_p2), %s537_s13, 4  ;;  %p399_p4 = scmp.ne.s32.totalorder (!%p134_p2), %s537_s13, 0 }
   0x6   : > { %137 = sbr.rel (%p134_p2) target bundleno = 754 (0x2f2), region = 32  ;;  %p153_p3 = scmp.lt.s32.totalorder (!%p134_p2), %s397_s14, 31 }
   0xb   : > { %s607_s14 = smov (!%p153_p3, %s397_s14), 31  ;;  %161 = sbr.rel (%p399_p4) target bundleno = 19 (0x13), region = 36 }
   0xc   : > { %s398_s15 = sshll.u32 %s607_s14, 3 }
   0xd   : > { %s545_s18 = scalar_lea.vmem %s604_s2, %s398_s15 }
  0x10   : > { %vm162_vm0 = vcmask 3072   ;;  %v506_v0 = vmov -inf   ;;  %v507_v1 = vmov 0.0  }
  0x11   : > { %163 = vst.msk [vmem:[#allocation2] sm:$0xf] %vm162_vm0, %v506_v0  ;;  %164 = vst.msk [vmem:[#allocation3] sm:$0xf] %vm162_vm0, %v507_v1 }
  0x12   : > { %165 = vst.msk [vmem:[#allocation4] sm:$0xf] %vm162_vm0, %v507_v1 }
  0x13 PF: > { %v182_v2 = vld [vmem:[%s545_s18 + $0x78] sm:$0xff]  ;;  %vm183_vm1 = vcmask 261120   ;;  %v508_v3 = vmov 0.0   ;;  %vm509_vm2 = vmmov 0   ;;  %v510_v4 = vmov 0   ;;  %v181_v5 = vld [vmem:[%s545_s18 + $0x70] sm:$0xff] }
  0x14   : > { %438 = vmatprep.subr.mxu0 %v508_v3  ;;  %470 = vmatprep.mubr.msk.f32.mxu0 %vm509_vm2, %v508_v3  ;;  %v337_v6 = vld [vmem:[%s602_s0] sm:$0xf]  ;;  %v180_v7 = vld [vmem:[%s545_s18 + $0x68] sm:$0xff]  ;;  %v178_v9 = vld [vmem:[%s545_s18 + $0x58] sm:$0xff]  ;;  %vm312_vm3 = vcmask 1043456   ;;  %vm334_vm4 = vcmask 3072   ;;  %v306_v33 = vlaneseq }
  0x15   : > { %439 = vmatpush3.xpose.msk.msra.mxu0 %vm183_vm1, %v182_v2  ;;  %487 = vset.pattern.permute.xlu1 %v510_v4  ;;  %v179_v8 = vld [vmem:[%s545_s18 + $0x60] sm:$0xff]  ;;  %v177_v10 = vld [vmem:[%s545_s18 + $0x50] sm:$0xff]  ;;  %v176_v11 = vld [vmem:[%s545_s18 + $0x48] sm:$0xff]  ;;  %s417_s23 = sshll.u32 %s537_s13, 7  ;;  %p418_p5 = scmp.ne.s32.totalorder %s537_s13, 1 }
  0x16   : > { %440 = vmatprep.subr.mxu0 %v508_v3  ;;  %486 = vset.pattern.permute.xlu0 %v510_v4  ;;  %v175_v12 = vld [vmem:[%s545_s18 + $0x40] sm:$0xff]  ;;  %v174_v13 = vld [vmem:[%s545_s18 + $0x38] sm:$0xff]  ;;  %v173_v14 = vld [vmem:[%s545_s18 + $0x30] sm:$0xff]  ;;  %v307_v34 = vand.u32 127, %v306_v33  ;;  %v309_v35 = vstv %s417_s23 }
  0x17   : > { %339 = vperm.xlu1 %487, %v337_v6   ;;  %v172_v15 = vld [vmem:[%s545_s18 + $0x28] sm:$0xff]  ;;  %v171_v16 = vld [vmem:[%s545_s18 + $0x20] sm:$0xff]  ;;  %v170_v17 = vld [vmem:[%s545_s18 + $0x18] sm:$0xff] }
  0x18   : > { %v169_v18 = vld [vmem:[%s545_s18 + $0x10] sm:$0xff]  ;;  %v168_v19 = vld [vmem:[%s545_s18 + $0x8] sm:$0xff]  ;;  %v167_v20 = vld [vmem:[%s545_s18] sm:$0xff]  ;;  %v310_v36 = vadd.s32 %v309_v35, %v307_v34 }
  0x19   : > { %441 = vmatpush3.xpose.msk.msra.mxu0 %vm183_vm1, %v181_v5  ;;  %v166_v21 = vld [vmem:[%s603_s1] sm:$0xf]  ;;  %v320_v44 = vld [vmem:[#allocation3] sm:$0xf]  ;;  %v342_v48 = vld [vmem:[#allocation4] sm:$0xf] }
  0x1a   : > { %442 = vmatprep.subr.mxu0 %v508_v3  ;;  %v311_v26 = vld [vmem:[#allocation2] sm:$0xf] }
  0x1d   : > { %443 = vmatpush3.xpose.msk.msra.mxu0 %vm183_vm1, %v180_v7 }
  0x1e   : > { %444 = vmatprep.subr.mxu0 %v508_v3 }
  0x21   : > { %445 = vmatpush3.xpose.msk.msra.mxu0 %vm183_vm1, %v179_v8 }
  0x22   : > { %446 = vmatprep.subr.mxu0 %v508_v3 }
  0x25   : > { %447 = vmatpush3.xpose.msk.msra.mxu0 %vm183_vm1, %v178_v9 }
  0x26   : > { %448 = vmatprep.subr.mxu0 %v508_v3 }
  0x29   : > { %449 = vmatpush3.xpose.msk.msra.mxu0 %vm183_vm1, %v177_v10 }
  0x2a   : > { %450 = vmatprep.subr.mxu0 %v508_v3 }
  0x2d   : > { %451 = vmatpush3.xpose.msk.msra.mxu0 %vm183_vm1, %v176_v11 }
  0x2e   : > { %452 = vmatprep.subr.mxu0 %v508_v3 }
  0x31   : > { %453 = vmatpush3.xpose.msk.msra.mxu0 %vm183_vm1, %v175_v12 }
  0x32   : > { %454 = vmatprep.subr.mxu0 %v508_v3 }
  0x35   : > { %455 = vmatpush3.xpose.msk.msra.mxu0 %vm183_vm1, %v174_v13 }
  0x36   : > { %456 = vmatprep.subr.mxu0 %v508_v3 }
  0x39   : > { %457 = vmatpush3.xpose.msk.msra.mxu0 %vm183_vm1, %v173_v14 }
  0x3a   : > { %458 = vmatprep.subr.mxu0 %v508_v3 }
  0x3d   : > { %459 = vmatpush3.xpose.msk.msra.mxu0 %vm183_vm1, %v172_v15 }
  0x3e   : > { %460 = vmatprep.subr.mxu0 %v508_v3 }
  0x41   : > { %461 = vmatpush3.xpose.msk.msra.mxu0 %vm183_vm1, %v171_v16 }
  0x42   : > { %462 = vmatprep.subr.mxu0 %v508_v3 }
  0x45   : > { %463 = vmatpush3.xpose.msk.msra.mxu0 %vm183_vm1, %v170_v17 }
  0x46   : > { %464 = vmatprep.subr.mxu0 %v508_v3 }
  0x49   : > { %465 = vmatpush3.xpose.msk.msra.mxu0 %vm183_vm1, %v169_v18 }
  0x4a   : > { %466 = vmatprep.subr.mxu0 %v508_v3 }
  0x4d   : > { %467 = vmatpush3.xpose.msk.msra.mxu0 %vm183_vm1, %v168_v19 }
  0x4e   : > { %468 = vmatprep.subr.mxu0 %v508_v3 }
  0x51   : > { %469 = vmatpush3.xpose.msk.msra.mxu0 %vm183_vm1, %v167_v20 }
  0x54   : > { %471 = vmatmul.mubr.msk.f32.vlgmr.msra.gmra.mxu0 %vm183_vm1, %v166_v21 }
  0x92   : > { %v340_v37 = vpop.permute.xlu1 %339 }
  0x93   : > { %vm341_vm5 = vcmp.eq.s32.totalorder %v310_v36, %v340_v37 }
 0x114   : > { %v301_v22 = vpop.f32.mrf.mxu0 }
 0x115   : > { %v305_v23 = vmul.f32 0.5, %v301_v22 }
 0x116   : > { %v472_v24 = vpop.f32.mrf.mxu0 }
 0x117   : > { %v313_v25 = vsel %vm312_vm3, %v305_v23, -inf  ;;  %v343_v40 = vsel %vm341_vm5, %v305_v23, 0.0 }
 0x118   : > { %314 = vmax.xlane.f32.xlu0 %v313_v25  ;;  %v344_v41 = vsel %vm312_vm3, %v343_v40, 0.0 }
 0x1a1   : > { %v315_v27 = vpop.xlane.xlu0 %314 }
 0x1a2   : > { %v316_v28 = vmax.f32 %v311_v26, %v315_v27 }
 0x1a4   : > { %v317_v29 = vsub.f32 %v311_v26, %v316_v28  ;;  %336 = vst.msk [vmem:[#allocation2] sm:$0xf] %vm334_vm4, %v316_v28  ;;  %324 = vperm.xlu0 %486, %v316_v28  }
 0x1a6   : > { %v318_v42 = vmul.f32 1.442695, %v317_v29 }
 0x21f   : > { %v325_v30 = vpop.permute.xlu0 %324 }
 0x220   : > { %v327_v31 = vsub.f32 %v305_v23, %v325_v30 }
 0x222   : > { %v328_v32 = vmul.f32 1.442695, %v327_v31 }
 0x224   : > { %488 = vpow2.f32 %v328_v32 }
 0x225   : > { %490 = vpow2.f32 %v318_v42 }
 0x231   : > { %v489_v38 = vpop.eup %488 }
 0x232   : > { %v330_v39 = vsel %vm312_vm3, %v489_v38, 0.0  ;;  %v491_v43 = vpop.eup %490 }
 0x233   : > { %331 = vadd.xlane.f32.xlu1 %v330_v39  ;;  %v321_v45 = vmul.f32 %v491_v43, %v320_v44 }
 0x237   : > { %345 = vadd.xlane.f32.xlu1 %v344_v41 }
 0x2bc   : > { %v332_v46 = vpop.xlane.xlu1 %331 }
 0x2bd   : > { %v333_v47 = vadd.f32 %v332_v46, %v321_v45 }
 0x2bf   : > { %335 = vst.msk [vmem:[#allocation3] sm:$0xf] %vm334_vm4, %v333_v47  ;;  %352 = sbr.rel (%p418_p5) target bundleno = 754 (0x2f2), region = 40 }
 0x2c0   : > { %v346_v49 = vpop.xlane.xlu1 %345 }
 0x2c1   : > { %v347_v50 = vadd.f32 %v346_v49, %v342_v48 }
 0x2c3   : > { %348 = vst.msk [vmem:[#allocation4] sm:$0xf] %vm334_vm4, %v347_v50 }
 0x2c4   : > { %v354_v52 = vld [vmem:[#allocation2] sm:$0xf] }
 0x2c6   : > { %v358_v53 = vld [vmem:[#allocation3] sm:$0xf] }
 0x2c7   : > { %492 = vrcp.f32 %v358_v53 }
 0x2ca   : > { %v353_v51 = vld [vmem:[#allocation4] sm:$0xf] }
 0x2cb   : > { %v355_v54 = vsub.f32 %v353_v51, %v354_v52 }
 0x2cd   : > { %v356_v55 = vmul.f32 1.442695, %v355_v54 }
 0x2cf   : > { %494 = vpow2.f32 %v356_v55 }
 0x2d4   : > { %v493_v56 = vpop.eup %492 }
 0x2dc   : > { %v495_v57 = vpop.eup %494 }
 0x2dd   : > { %v360_v58 = vmul.f32 %v495_v57, %v493_v56 }
 0x2df   : > { %v361_v59 = vadd.f32 1e-08, %v360_v58 }
 0x2e1   : > { %496 = vlog2.f32 %v361_v59 }
 0x2ee   : > { %v497_v60 = vpop.eup %496 }
 0x2ef   : > { %v363_v61 = vmul.f32 0.6931472, %v497_v60 }
 0x2f1   : > { %364 = vst.msk [vmem:[%s605_s3] sm:$0xf] %vm334_vm4, %v363_v61 }
 0x2f2 PF: > { %s13_s12 = sadd.s32 1, %s504_s12  }
 0x2f3   : > { %p10_p6 = scmp.ge.s32.totalorder %s13_s12, 4  }
 0x2f5   :  { %12 = sbr.rel (!%p10_p6) target bundleno = 1 (0x1), region = 66 }

</bundles_post_ra>
